<compile_context>
chip_gen: v7x
topology: tpu7x:2x2x1
jax: 0.10.0
libtpu: 0.0.40
codegen_flags: <defaults>
</compile_context>

<pallas_src>
import functools

import jax
import jax.numpy as jnp
from jax.experimental import pallas as pl
from jax.experimental.pallas import tpu as pltpu


def _round_up(x, m):
    return (x + m - 1) // m * m


def _pooling_kernel(seg_ref, x_ref, out_ref, acc_ref, *maybe_cnt, reduce, num_nodes):
    """Grid = (D blocks ['parallel'], node blocks ['arbitrary' reduction])."""
    i = pl.program_id(1)                                   # node-block index (reduction)
    cnt_ref = maybe_cnt[0] if reduce == "mean" else None

    @pl.when(i == 0)
    def _():
        acc_ref[...] = jnp.zeros_like(acc_ref)
        if reduce == "mean":
            cnt_ref[...] = jnp.zeros_like(cnt_ref)

    tile_n, tile_d = x_ref.shape
    g_pad = acc_ref.shape[0]

    # Lane-dense segment-id tile for this node block: (1, tile_n) int32.
    seg = seg_ref[...]

    # Transposed one-hot membership: one_hot[g, n] = 1 iff node n belongs to graph g.
    # Sublane iota over graphs, lane-wise compare against the seg row (cheap sublane
    # broadcast) -> native MXU orientation (contract last dim of lhs with first of rhs).
    graph_ids = jax.lax.broadcasted_iota(jnp.int32, (g_pad, tile_n), 0)
    match = graph_ids == seg                               # (g_pad, tile_n) bool
    one_hot = match.astype(x_ref.dtype)                    # bf16 stays bf16 for the MXU

    x = x_ref[...]                                         # (tile_n, tile_d), native dtype
    if num_nodes % tile_n != 0:
        # x is NOT padded on the host: the ragged tail node block holds garbage rows
        # (arbitrary bits, possibly NaN/Inf). Zero them explicitly -- a 0 weight in the
        # one-hot does not protect against 0 * NaN. Cheap VPU select, free under an
        # HBM-bound main loop. (Padded seg ids are -1, so counts need no extra mask.)
        row = jax.lax.broadcasted_iota(jnp.int32, (tile_n, tile_d), 0)
        x = jnp.where(row < (num_nodes - i * tile_n), x, jnp.zeros_like(x))

    # Scatter-add on the MXU: (g_pad, tile_n) @ (tile_n, tile_d) -> f32 accumulator.
    acc_ref[...] += jnp.dot(one_hot, x, preferred_element_type=jnp.float32)

    if reduce == "mean":
        # Per-graph node counts, directly in (g_pad, 1) orientation for the epilogue.
        cnt_ref[...] += jnp.sum(match.astype(jnp.float32), axis=1, keepdims=True)

    @pl.when(i == pl.num_programs(1) - 1)
    def _():
        res = acc_ref[...]
        if reduce == "mean":
            # Exact divide: epilogue runs once per D block, approx reciprocal buys nothing.
            res = res / jnp.maximum(cnt_ref[...], 1.0)     # empty graphs -> 0
        out_ref[...] = res.astype(out_ref.dtype)


def pooling(x, segments, num_graphs, *, reduce="sum", tile_n=None, tile_d=None,
            vmem_limit_bytes=None):
    """Equivalent of Pooling.forward: scatter(input, batch, dim=0, reduce=reduce).

    x          : (N, D) node features (f32 or bf16)
    segments   : (N,)   int graph index per node
    num_graphs : static number of graphs (pass from the batcher; deriving it on
                 device forces a host sync + recompile per distinct graph count).
    """
    assert reduce in ("sum", "mean")
    n, d = x.shape

    # ---- geometry ---------------------------------------------------------
    g_pad = _round_up(max(int(num_graphs), 1), 16)          # full-sublane accumulator rows

    # Node tile: multiple of 128 (lane-dense seg tiles, deep MXU contraction, big DMAs).
    if tile_n is None:
        tile_n = 512 if x.dtype == jnp.bfloat16 else 256
    tile_n = max(128, _round_up(min(tile_n, _round_up(n, 128)), 128))
    num_n = pl.cdiv(n, tile_n)
    n_pad = num_n * tile_n                                  # seg-only padding (N ints, cheap)

    # Feature tile: multiple of 128 (lane-dense accumulator / output writeback).
    d128 = _round_up(d, 128)
    if tile_d is None:
        tile_d = 512
    tile_d = max(128, _round_up(min(tile_d, d128), 128))
    if pl.cdiv(d, tile_d) == 1 and d128 >= 256:
        # Keep >= 2 feature blocks so the 'parallel' D axis can be split across the two
        # TensorCores of a v7x megacore; negligible cost on single-TC v5e/v6e.
        tile_d = max(128, _round_up(d128 // 2, 128))
    num_d = pl.cdiv(d, tile_d)
    d_out = num_d * tile_d

    # ---- segment ids: lane-dense (1, n_pad); padded nodes get id -1 --------
    seg_p = jnp.pad(segments.reshape(n).astype(jnp.int32), (0, n_pad - n),
                    constant_values=-1).reshape(1, n_pad)

    kernel = functools.partial(_pooling_kernel, reduce=reduce, num_nodes=n)
    scratch = [pltpu.VMEM((g_pad, tile_d), jnp.float32)]            # accumulator
    if reduce == "mean":
        scratch.append(pltpu.VMEM((g_pad, 1), jnp.float32))         # per-graph counts

    out = pl.pallas_call(
        kernel,
        out_shape=jax.ShapeDtypeStruct((g_pad, d_out), x.dtype),
        grid_spec=pltpu.PrefetchScalarGridSpec(
            num_scalar_prefetch=0,
            grid=(num_d, num_n),                  # (feature blocks, node blocks)
            in_specs=[
                # lane-dense segment-id tile, pipelined alongside x
                pl.BlockSpec((1, tile_n), lambda j, i: (0, i)),
                # node-feature tile straight from the UNPADDED array; the ragged tail
                # node block is masked in-kernel, D-tail garbage never reaches real
                # output columns.
                # TODO(synk): add pipeline_mode=pl.Buffered(3) here if profiling shows
                # exposed DMA on the x stream.
                pl.BlockSpec((tile_n, tile_d), lambda j, i: (i, j)),
            ],
            out_specs=pl.BlockSpec((g_pad, tile_d), lambda j, i: (0, j)),
            scratch_shapes=scratch,
        ),
        compiler_params=pltpu.CompilerParams(
            # feature axis is independent -> shard across TensorCores (v7x megacore);
            # node axis is the reduction -> 'arbitrary'
            dimension_semantics=("parallel", "arbitrary"),
            vmem_limit_bytes=vmem_limit_bytes,
        ),
    )(seg_p, x)
    return out[:num_graphs, :d]


def pooling_forward(data, num_graphs=None, reduce="sum"):
    """Mirrors Pooling.forward(data, attrs) -> ({'output': pooled}, attrs)."""
    x = data["input"]
    segments = data["_node_segment"]
    if num_graphs is None:
        # Host sync + recompile per distinct graph count; prefer passing it statically.
        num_graphs = int(jax.device_get(jnp.max(segments))) + 1
    out = pooling(x, segments, num_graphs, reduce=reduce)
    attrs = {"output": ("graph", None)}  # TODO(synk): irreps metadata not represented in JAX
    return {"output": out}, attrs


if __name__ == "__main__":
    key = jax.random.PRNGKey(0)
    k1, k2 = jax.random.split(key)

    # Small shapes that still exercise: multiple node blocks with a ragged tail
    # (in-kernel masking of unpadded x), multiple feature blocks with a ragged D tail,
    # and G padding of the accumulator.
    N, D, G = 300, 200, 5
    x = jax.random.normal(k1, (N, D), dtype=jnp.float32)
    segments = jax.random.randint(k2, (N,), 0, G).astype(jnp.int32)

    ref_sum = jax.ops.segment_sum(x, segments, num_segments=G)

    # --- sum pooling: explicit small tiles -> grid (2 feature blocks, 3 node blocks,
    #     last node block ragged) ---
    out_sum = pooling(x, segments, G, reduce="sum", tile_n=128, tile_d=128)
    jax.block_until_ready(out_sum)
    assert out_sum.shape == (G, D)
    assert jnp.allclose(out_sum, ref_sum, atol=1e-4, rtol=1e-4)

    # --- mean pooling (default tiles, exact-divide epilogue) ---
    out_mean = pooling(x, segments, G, reduce="mean")
    jax.block_until_ready(out_mean)
    cnt = jax.ops.segment_sum(jnp.ones((N,), jnp.float32), segments, num_segments=G)
    ref_mean = ref_sum / jnp.maximum(cnt, 1.0)[:, None]
    assert jnp.allclose(out_mean, ref_mean, atol=1e-4, rtol=1e-4)

    # --- bf16 input hits the native bf16 MXU path (f32 accumulation) ---
    x_bf = x.astype(jnp.bfloat16)
    out_bf = pooling(x_bf, segments, G, reduce="sum")
    jax.block_until_ready(out_bf)
    ref_bf = jax.ops.segment_sum(x_bf.astype(jnp.float32), segments, num_segments=G)
    assert out_bf.dtype == jnp.bfloat16
    assert jnp.allclose(out_bf.astype(jnp.float32), ref_bf, atol=5e-2, rtol=2e-2)

    # --- module-style forward wrapper ---
    data = {"input": x, "_node_segment": segments}
    out_fwd, attrs = pooling_forward(data, num_graphs=G, reduce="sum")
    jax.block_until_ready(out_fwd["output"])
    assert jnp.allclose(out_fwd["output"], ref_sum, atol=1e-4, rtol=1e-4)

    print("KERNEL_OK")
</pallas_src>

<mosaic_0001>
module attributes {stable_mosaic.version = 11 : i64} {
  func.func @_pooling_kernel(%arg0: i32, %arg1: i32, %arg2: memref<1x128xi32, #tpu.memory_space<vmem>>, %arg3: memref<128x128xf32, #tpu.memory_space<vmem>>, %arg4: memref<16x128xf32, #tpu.memory_space<vmem>>, %arg5: memref<16x128xf32, #tpu.memory_space<vmem>>) attributes {dimension_semantics = [#tpu.dimension_semantics<parallel>, #tpu.dimension_semantics<arbitrary>], iteration_bounds = array<i64: 2, 3>, scalar_prefetch = 0 : i64, scratch_operands = 1 : i64, tpu.core_type = #tpu.core_type<tc>, window_params = [{transform_indices = @transform_0, window_bounds = array<i64: 1, 128>}, {transform_indices = @transform_1, window_bounds = array<i64: 128, 128>}, {transform_indices = @transform_2, window_bounds = array<i64: 16, 128>}]} {
    %c0_i32 = arith.constant 0 : i32
    %0 = arith.cmpi eq, %arg1, %c0_i32 : i32
    %1 = arith.extui %0 : i1 to i32
    %c0_i32_0 = arith.constant 0 : i32
    %2 = arith.cmpi ne, %1, %c0_i32_0 : i32
    scf.if %2 {
      %cst_10 = arith.constant 0.000000e+00 : f32
      %24 = vector.broadcast %cst_10 : f32 to vector<16x128xf32>
      %c0_11 = arith.constant 0 : index
      %c0_12 = arith.constant 0 : index
      %25 = vector.load %arg5[%c0_11, %c0_12] : memref<16x128xf32, #tpu.memory_space<vmem>>, vector<16x128xf32>
      tpu.vector_store %arg5[%c0_11, %c0_12], %24 {strides = array<i32>} : memref<16x128xf32, #tpu.memory_space<vmem>>, vector<16x128xf32>,
    } else {
    }
    %c0 = arith.constant 0 : index
    %c0_1 = arith.constant 0 : index
    %3 = vector.load %arg2[%c0, %c0_1] : memref<1x128xi32, #tpu.memory_space<vmem>>, vector<1x128xi32>
    %4 = tpu.iota {dimensions = array<i32: 0>} : vector<16x128xi32>
    %5 = vector.broadcast %3 : vector<1x128xi32> to vector<16x128xi32>
    %6 = arith.cmpi eq, %4, %5 : vector<16x128xi32>
    %7 = arith.extui %6 : vector<16x128xi1> to vector<16x128xi32>
    %8 = arith.sitofp %7 : vector<16x128xi32> to vector<16x128xf32>
    %c0_2 = arith.constant 0 : index
    %c0_3 = arith.constant 0 : index
    %9 = vector.load %arg3[%c0_2, %c0_3] : memref<128x128xf32, #tpu.memory_space<vmem>>, vector<128x128xf32>
    %10 = tpu.iota {dimensions = array<i32: 0>} : vector<128x128xi32>
    %c128_i32 = arith.constant 128 : i32
    %11 = arith.muli %arg1, %c128_i32 : i32
    %c300_i32 = arith.constant 300 : i32
    %12 = arith.subi %c300_i32, %11 : i32
    %13 = vector.broadcast %12 : i32 to vector<128x128xi32>
    %14 = arith.cmpi slt, %10, %13 : vector<128x128xi32>
    %cst = arith.constant 0.000000e+00 : f32
    %15 = vector.broadcast %cst : f32 to vector<128x128xf32>
    %16 = arith.select %14, %9, %15 : vector<128x128xi1>, vector<128x128xf32>
    %c0_4 = arith.constant 0 : index
    %c0_5 = arith.constant 0 : index
    %17 = vector.load %arg5[%c0_4, %c0_5] : memref<16x128xf32, #tpu.memory_space<vmem>>, vector<16x128xf32>
    %cst_6 = arith.constant dense<0.000000e+00> : vector<16x128xf32>
    %18 = tpu.matmul %8, %16, %cst_6 {dimension_numbers = #tpu.dot_dimension_numbers<[1], [0], [0], [1], [0, 0, 1, 1], [], []>} : vector<16x128xf32>, vector<128x128xf32>, vector<16x128xf32> -> vector<16x128xf32>
    %19 = arith.addf %17, %18 : vector<16x128xf32>
    %c0_7 = arith.constant 0 : index
    %c0_8 = arith.constant 0 : index
    %20 = vector.load %arg5[%c0_7, %c0_8] : memref<16x128xf32, #tpu.memory_space<vmem>>, vector<16x128xf32>
    tpu.vector_store %arg5[%c0_7, %c0_8], %19 {strides = array<i32>} : memref<16x128xf32, #tpu.memory_space<vmem>>, vector<16x128xf32>,
    %c2_i32 = arith.constant 2 : i32
    %21 = arith.cmpi eq, %arg1, %c2_i32 : i32
    %22 = arith.extui %21 : i1 to i32
    %c0_i32_9 = arith.constant 0 : i32
    %23 = arith.cmpi ne, %22, %c0_i32_9 : i32
    scf.if %23 {
      %c0_10 = arith.constant 0 : index
      %c0_11 = arith.constant 0 : index
      %24 = vector.load %arg5[%c0_10, %c0_11] : memref<16x128xf32, #tpu.memory_space<vmem>>, vector<16x128xf32>
      %c0_12 = arith.constant 0 : index
      %c0_13 = arith.constant 0 : index
      %25 = vector.load %arg4[%c0_12, %c0_13] : memref<16x128xf32, #tpu.memory_space<vmem>>, vector<16x128xf32>
      tpu.vector_store %arg4[%c0_12, %c0_13], %24 {strides = array<i32>} : memref<16x128xf32, #tpu.memory_space<vmem>>, vector<16x128xf32>,
    } else {
    }
    return
  }
  func.func @transform_0(%arg0: i32, %arg1: i32) -> (i32, i32) {
    %c0_i32 = arith.constant 0 : i32
    %c0_i32_0 = arith.constant 0 : i32
    return %c0_i32, %arg1 : i32, i32
  }
  func.func @transform_1(%arg0: i32, %arg1: i32) -> (i32, i32) {
    %c0_i32 = arith.constant 0 : i32
    return %arg1, %arg0 : i32, i32
  }
  func.func @transform_2(%arg0: i32, %arg1: i32) -> (i32, i32) {
    %c0_i32 = arith.constant 0 : i32
    %c0_i32_0 = arith.constant 0 : i32
    return %c0_i32, %arg0 : i32, i32
  }
}

</mosaic_0001>

<bundles_post_ra>
// kernel: tpu_custom_call.1
= control target key start
LH: loop header
LB: loop body
LE: loop exit
PB: predicated region body
PF: predicated region fallthrough
CT: control target
= control target key end

     0   :  { %s1555_s0 = inlined_call_operand.vmem [shape: s32[1,384], index: 0, kind: input, shape index: {}]   ;;  %s1556_s1 = inlined_call_operand.vmem [shape: f32[300,200], index: 1, kind: input, shape index: {}]   ;;  %s1557_s2 = inlined_call_operand.hbm [shape: f32[16,256], index: 2, kind: output, shape index: {}]  }
   0x1   :  { %1560 = sst [smem:[#allocation9_spill]] %s1556_s1 }
   0x2   :  { %7 = vsyncpa [#allocation5], 0 }
   0x3   :  { %9 = vsyncpa [#allocation5 + $0x1], 0  ;;  %s1179_s9 = smov 0   ;;  %s1181_s10 = smov 0  }
   0x4   :  { %s1183_s11 = smov 0   ;;  %s1185_s12 = smov 0  }
   0x5   :  { %s1187_s13 = smov 0   ;;  %s1189_s14 = smov 0  }
   0x6   :  { %s1191_s15 = smov 0   ;;  %s1193_s16 = smov 0  }
   0x7   :  { %s1195_s17 = smov 0   ;;  %s1197_s18 = smov 0  }
   0x8 LB: > { %s671_s19 = sadd.s32 4294967295, %s1124_s18   ;;  %s672_s20 = sadd.s32 4294967294, %s1124_s18   ;;  %s1124_s18 = sphi %s1197_s18, %s15_s18   ;;  %s1120_s17 = sphi %s1195_s17, %s1588_s17   ;;  %s1116_s16 = sphi %s1193_s16, %s1587_s16   ;;  %s1112_s15 = sphi %s1191_s15, %s1586_s15   ;;  %s1108_s14 = sphi %s1189_s14, %s1585_s14   ;;  %s1104_s13 = sphi %s1187_s13, %s1584_s13   ;;  %s1100_s12 = sphi %s1185_s12, %s1583_s12   ;;  %s1096_s11 = sphi %s1183_s11, %s1582_s11   ;;  %s1092_s10 = sphi %s1181_s10, %s1581_s10   ;;  %s1088_s9 = sphi %s1179_s9, %s1580_s9  }
   0x9   : > { %s24_s21 = sadd.s32 1, %s1116_s16  ;;  %s27_s22 = sadd.s32 1, %s1120_s17 }
   0xa   : > { %p25_p0 = scmp.ge.s32.totalorder %s24_s21, 3  ;;  %s62_s23 = sadd.s32 1, %s1104_s13 }
   0xb   : > { %p69_p1 = scmp.ne.s32.totalorder %s1104_s13, %s1100_s12  ;;  %p70_p2 = scmp.eq.s32.totalorder %s1124_s18, 0 }
   0xc   : > { %s1590_s21 = smov (%p25_p0, %s24_s21), 0  ;;  %s1592_s22 = smov (!%p25_p0, %s27_s22), %s1120_s17 }
   0xd   : > { %1561 = sst [smem:[#allocation7_spill]] %s1590_s21  ;;  %s57_s24 = ssub.s32 %s1116_s16, %s1590_s21 }
   0xe   : > { %p1242_p3 = por %p70_p2, %p69_p1  ;;  %p29_p4 = scmp.ge.s32.totalorder %s1592_s22, 2 }
   0xf   : > { %s88_s26 = sadd.s32 1, %s1096_s11  ;;  %p98_p5 = scmp.ne.s32.totalorder %s1096_s11, %s1092_s10 }
  0x10   : > { %p99_p6 = scmp.eq.s32.totalorder %s671_s19, 5  ;;  %s1594_s22 = smov (%p29_p4, %s1592_s22), 0 }
  0x11   : > { %1563 = sst [smem:[#allocation8_spill]] %s1594_s22  ;;  %p104_p8 = scmp.ne.s32.totalorder %s1092_s10, %s1088_s9 }
  0x12   : > { %p1251_p7 = por %p99_p6, %p98_p5  ;;  %s58_s28 = ssub.s32 %s1120_s17, %s1594_s22 }
  0x13   : > { %p105_p9 = scmp.eq.s32.totalorder %s672_s20, 5  ;;  %s59_s29 = sor.u32 %s58_s28, %s57_s24 }
  0x14   : > { %p86_p10 = scmp.eq.s32.totalorder %s58_s28, 0  ;;  %p60_p11 = scmp.eq.s32.totalorder %s59_s29, 0 }
  0x15   : > { %p1259_p12 = por %p105_p9, %p104_p8  ;;  %p674_p13 = scmp.ge.s32.totalorder %s1124_s18, 6 }
  0x16   : > { %s1264_s3 = scalar_select %p86_p10, %s1096_s11, %s88_s26  }
  0x17   : > { %s1267_s4 = scalar_select %p60_p11, %s1104_s13, %s62_s23  }
  0x18   : > { %121 = sbr.rel (%p674_p13) target bundleno = 87 (0x57), region = 16 }
  0x1f   : > { %130 = sbr.rel (!%p1242_p3) target bundleno = 87 (0x57), region = 24  ;;  %s132_s5 = sand.u32 (%p1242_p3), 1, %s1104_s13  }
  0x20   : > { %s676_s6 = sshll.u32 (%p1242_p3), %s1116_s16, 4  ;;  %s675_s7 = sshll.u32 (%p1242_p3), %s132_s5, 7 }
  0x21   : > { %s136_s8 = ssub.s32 (%p1242_p3), 38, %s676_s6  ;;  %s722_s19 = sshll.u32 (%p1242_p3), %s1116_s16, 5 }
  0x22   : > { %p137_p0 = scmp.lt.s32.totalorder (%p1242_p3), %s136_s8, 16  ;;  %s142_s20 = sadd.s32 (%p1242_p3), %s1120_s17, %s722_s19 }
  0x23   : > { %s680_s24 = sshll.u32 (%p1242_p3), %s142_s20, 3  ;;  %s1566_s1 = sld [smem:[#allocation9_spill]] (%p1242_p3) }
  0x24   : > { %s1284_s29 = scalar_lea.vmem (%p1242_p3), [#allocation3], %s675_s7  }
  0x26   : > { %s1596_s8 = smov (!%p137_p0, %s136_s8), 16 }
  0x27   : > { %s677_s23 = sshll.u32 %s1596_s8, 7 }
  0x28   : > { %p681_p1 = scmp.eq.s32.totalorder %s677_s23, 0 }
  0x29   : > { %s1282_s25 = scalar_lea.vmem %s1566_s1, %s680_s24   ;;  %s1287_s5 = sshrl.u32 (!%p681_p1), %s1596_s8, 4 }
  0x2a   : > { %147 = sbr.rel (%p681_p1) target bundleno = 87 (0x57), region = 28  ;;  %p682_p2 = scmp.le.s32.totalorder (!%p681_p1), %s1287_s5, 0 }
  0x31   : > { %610 = sbr.rel (%p682_p2) target bundleno = 66 (0x42), region = 133  ;;  %s1567_s6 = smov (!%p682_p2), %s1284_s29 }
  0x32   : > { %s1568_s19 = smov (!%p682_p2), %s1282_s25  ;;  %s1296_s20 = smov (!%p682_p2), 0  }
  0x33   : > { %s1298_s24 = smov (!%p682_p2), 0  }
  0x38 LB: >> { %v239_v0 = vld [vmem:[%s1132_s19] sm:$0xff]  ;;  %v241_v1 = vld [vmem:[%s1132_s19 + $0x10] sm:$0xff]  ;;  %s271_s7 = sadd.s32 1, %s1136_s20  ;;  %s233_s24 = sadd.s32 1, %s1140_s24   ;;  %s1140_s24 = sphi %s1298_s24, %s233_s24   ;;  %s1136_s20 = sphi %s1296_s20, %s1569_s20   ;;  %s1132_s19 = sphi %s1568_s19, %s276_s19   ;;  %s1128_s6 = sphi %s1567_s6, %s277_s6  }
  0x39   : >> { %v243_v2 = vld [vmem:[%s1132_s19 + $0x20] sm:$0xff]  ;;  %240 = vst [vmem:[%s1128_s6] sm:$0xff] %v239_v0  ;;  %242 = vst [vmem:[%s1128_s6 + $0x8] sm:$0xff] %v241_v1  ;;  %v245_v3 = vld [vmem:[%s1132_s19 + $0x30] sm:$0xff]  ;;  %p272_p3 = scmp.ge.s32.totalorder %s271_s7, %s1287_s5  ;;  %p232_p4 = scmp.ge.s32.totalorder %s233_s24, %s1287_s5 }
  0x3a   : >> { %244 = vst [vmem:[%s1128_s6 + $0x10] sm:$0xff] %v243_v2  ;;  %v247_v4 = vld [vmem:[%s1132_s19 + $0x40] sm:$0xff]  ;;  %v249_v5 = vld [vmem:[%s1132_s19 + $0x50] sm:$0xff]  ;;  %246 = vst [vmem:[%s1128_s6 + $0x18] sm:$0xff] %v245_v3 }
  0x3b   : >> { %248 = vst [vmem:[%s1128_s6 + $0x20] sm:$0xff] %v247_v4  ;;  %250 = vst [vmem:[%s1128_s6 + $0x28] sm:$0xff] %v249_v5  ;;  %v251_v6 = vld [vmem:[%s1132_s19 + $0x60] sm:$0xff]  ;;  %v253_v7 = vld [vmem:[%s1132_s19 + $0x70] sm:$0xff]  ;;  %s1598_s7 = smov (%p272_p3, %s271_s7), 0  ;;  %235 = sbr.rel (!%p232_p4) target bundleno = 56 (0x38), region = 139 }
  0x3c   : >> { %v255_v8 = vld [vmem:[%s1132_s19 + $0x80] sm:$0xff]  ;;  %252 = vst [vmem:[%s1128_s6 + $0x30] sm:$0xff] %v251_v6  ;;  %254 = vst [vmem:[%s1128_s6 + $0x38] sm:$0xff] %v253_v7  ;;  %v257_v9 = vld [vmem:[%s1132_s19 + $0x90] sm:$0xff]  ;;  %s683_s23 = sshll.u32 %s1598_s7, 8  ;;  %s684_s26 = sshll.u32 %s1598_s7, 7 }
  0x3d   : >> { %256 = vst [vmem:[%s1128_s6 + $0x40] sm:$0xff] %v255_v8  ;;  %v259_v10 = vld [vmem:[%s1132_s19 + $0xa0] sm:$0xff]  ;;  %v261_v11 = vld [vmem:[%s1132_s19 + $0xb0] sm:$0xff]  ;;  %258 = vst [vmem:[%s1128_s6 + $0x48] sm:$0xff] %v257_v9  ;;  %s1569_s20 = smov %s1598_s7 }
  0x3e   : >> { %260 = vst [vmem:[%s1128_s6 + $0x50] sm:$0xff] %v259_v10  ;;  %262 = vst [vmem:[%s1128_s6 + $0x58] sm:$0xff] %v261_v11  ;;  %v263_v12 = vld [vmem:[%s1132_s19 + $0xc0] sm:$0xff]  ;;  %v265_v13 = vld [vmem:[%s1132_s19 + $0xd0] sm:$0xff] }
  0x3f   : >> { %v267_v14 = vld [vmem:[%s1132_s19 + $0xe0] sm:$0xff]  ;;  %264 = vst [vmem:[%s1128_s6 + $0x60] sm:$0xff] %v263_v12  ;;  %266 = vst [vmem:[%s1128_s6 + $0x68] sm:$0xff] %v265_v13  ;;  %v269_v15 = vld [vmem:[%s1132_s19 + $0xf0] sm:$0xff]  ;;  %s276_s19 = scalar_lea.vmem %s1282_s25, %s683_s23  }
  0x40   : >> { %268 = vst [vmem:[%s1128_s6 + $0x70] sm:$0xff] %v267_v14  ;;  %270 = vst [vmem:[%s1128_s6 + $0x78] sm:$0xff] %v269_v15  ;;  %s277_s6 = scalar_lea.vmem %s1284_s29, %s684_s26 [#allocation3]  }
  0x42 PF: > { %s1356_s28 = sand.u32 15, %s1596_s8   ;;  %s723_s23 = sshll.u32 %s1287_s5, 8 }
  0x43   : > { %s1360_s26 = scalar_lea.vmem %s1282_s25, %s723_s23   ;;  %s724_s1 = sshll.u32 %s1287_s5, 7 }
  0x44   : > { %s284_s22 = scalar_lea.vmem %s1284_s29, %s724_s1 [#allocation3]   ;;  %p688_p5 = scmp.le.s32.totalorder %s1356_s28, 0 }
  0x45   : > { %s1142_s7 = smov (!%p688_p5), %s284_s22   ;;  %s1146_s24 = smov (!%p688_p5), %s1360_s26  }
  0x46   : > { %624 = sbr.rel (%p688_p5) target bundleno = 87 (0x57), region = 144  ;;  %s1150_s21 = smov (!%p688_p5), 0  }
  0x47   : > { %s1154_s6 = smov (!%p688_p5), 0  }
  0x4d LB: >> { %v294_v16 = vld [vmem:[%s1148_s24] sm:$0xff]  ;;  %s296_s8 = sadd.s32 1, %s1152_s21  ;;  %s288_s6 = sadd.s32 1, %s1156_s6   ;;  %s1156_s6 = sphi %s1154_s6, %s288_s6   ;;  %s1152_s21 = sphi %s1150_s21, %s1151_s21   ;;  %s1148_s24 = sphi %s1146_s24, %s301_s24   ;;  %s1144_s7 = sphi %s1142_s7, %s302_s7  }
  0x4e   : >> { %295 = vst [vmem:[%s1144_s7] sm:$0xff] %v294_v16  ;;  %p297_p6 = scmp.ge.s32.totalorder %s296_s8, %s1356_s28  ;;  %p287_p8 = scmp.ge.s32.totalorder %s288_s6, %s1356_s28 }
  0x50   : >> { %s1600_s8 = smov (%p297_p6, %s296_s8), 0  ;;  %290 = sbr.rel (!%p287_p8) target bundleno = 77 (0x4d), region = 150 }
  0x51   : >> { %s689_s1 = sshll.u32 %s1600_s8, 4  ;;  %s690_s25 = sshll.u32 %s1600_s8, 3 }
  0x52   : >> { %s301_s24 = scalar_lea.vmem %s1360_s26, %s689_s1   ;;  %s302_s7 = scalar_lea.vmem %s284_s22, %s690_s25 [#allocation3]  }
  0x53   : >> { %s1151_s21 = smov %s1600_s8  }
  0x57 PF: > { %p691_p9 = scmp.ge.s32.totalorder %s1124_s18, 1  ;;  %p307_p10 = scmp.lt.s32.totalorder %s1124_s18, 7 }
  0x59   : > { %p308_p11 = pnand %p691_p9, %p307_p10 }
  0x5a   : > { %s314_s21 = sand.u32 (!%p308_p11), 1, %s1100_s12   ;;  %s335_s29 = sand.u32 (!%p308_p11), 1, %s1092_s10  }
  0x5b   : > { %311 = sbr.rel (%p308_p11) target bundleno = 396 (0x18c), region = 76  ;;  %s692_s5 = sshll.u32 (!%p308_p11), %s314_s21, 7 }
  0x5c   : > { %s693_s19 = sshll.u32 (!%p308_p11), %s335_s29, 4  ;;  %p338_p13 = scmp.lt.s32.totalorder (!%p308_p11), %s1108_s14, 2 }
  0x5d   : > { %s1383_s26 = scalar_lea.vmem (!%p308_p11), [#allocation3], %s692_s5  ;;  %s1385_s7 = scalar_lea.vmem (!%p308_p11), [#allocation4], %s693_s19 }
  0x5e   : > { %p694_p0 = scmp.ne.s32.totalorder (!%p308_p11), %s1108_s14, 0 }
  0x62   : > { %s1377_s22 = scalar_select %p338_p13, %s1108_s14, 2 }
  0x63   : > { %349 = sbr.rel (%p694_p0) target bundleno = 106 (0x6a), region = 84  ;;  %v1158_v17 = vmov (!%p694_p0), 0.0  }
  0x64   : > { %s340_s23 = scalar_lea.vmem %s1555_s0, %s1377_s22  ;;  %350 = vst [vmem:[#allocation2] sm:$0xff] (!%p694_p0), %v1158_v17  ;;  %351 = vst [vmem:[#allocation2 + $0x8] sm:$0xff] (!%p694_p0), %v1158_v17 }
  0x6a PF: > { %v353_v18 = vlaneseq  ;;  %v366_v19 = vld [vmem:[%s1383_s26] sm:$0xff]  ;;  %v367_v20 = vld [vmem:[%s1383_s26 + $0x8] sm:$0xff]  ;;  %s698_s12 = sshll.u32 %s1108_s14, 7  ;;  %v368_v24 = vld [vmem:[%s1383_s26 + $0x10] sm:$0xff]  ;;  %v1159_v44 = vmov 1.0   ;;  %p717_p1 = scmp.ne.s32.totalorder %s1108_s14, 2 }
  0x6b   : > { %s397_s24 = ssub.s32 300, %s698_s12  ;;  %v778_v23 = vpack.c.bf16 %v367_v20, %v366_v19  ;;  %v369_v25 = vld [vmem:[%s1383_s26 + $0x18] sm:$0xff]  ;;  %v370_v32 = vld [vmem:[%s1383_s26 + $0x20] sm:$0xff]  ;;  %v371_v33 = vld [vmem:[%s1383_s26 + $0x28] sm:$0xff] }
  0x6c   : > { %v1391_v21 = vshrl.u32 %v353_v18, 7  ;;  %v1393_v22 = vstv %s397_s24  ;;  %v784_v31 = vpack.c.bf16 %v369_v25, %v368_v24  ;;  %v695_v37 = vld [vmem:[%s340_s23] ss:$0 sm:$0xff]  ;;  %v790_v38 = vpack.c.bf16 %v371_v33, %v370_v32  ;;  %v373_v41 = vld [vmem:[%s1383_s26 + $0x38] sm:$0xff]  ;;  %v374_v47 = vld [vmem:[%s1383_s26 + $0x40] sm:$0xff] }
  0x6d   : > { %v372_v40 = vld [vmem:[%s1383_s26 + $0x30] sm:$0xff]  ;;  %v375_v48 = vld [vmem:[%s1383_s26 + $0x48] sm:$0xff]  ;;  %v377_v54 = vld [vmem:[%s1383_s26 + $0x58] sm:$0xff] }
  0x6e   : > { %v1398_v26 = vadd.s32 8, %v1391_v21  ;;  %vm399_vm0 = vcmp.lt.s32.totalorder %v1391_v21, %v1393_v22  ;;  %v382_v27 = vadd.s32 16, %v1391_v21  ;;  %v383_v28 = vadd.s32 24, %v1391_v21  ;;  %v376_v53 = vld [vmem:[%s1383_s26 + $0x50] sm:$0xff]  ;;  %v378_v58 = vld [vmem:[%s1383_s26 + $0x60] sm:$0xff]  ;;  %v379_v59 = vld [vmem:[%s1383_s26 + $0x68] sm:$0xff] }
  0x6f   : > { %v384_v29 = vadd.s32 32, %v1391_v21  ;;  %v385_v30 = vadd.s32 40, %v1391_v21  ;;  %v386_v35 = vadd.s32 48, %v1391_v21  ;;  %v387_v36 = vadd.s32 56, %v1391_v21  ;;  %v380_v63 = vld [vmem:[%s1383_s26 + $0x70] sm:$0xff]  ;;  %v381_v0 = vld [vmem:[%s1383_s26 + $0x78] sm:$0xff] }
  0x70   : > { %vm400_vm1 = vcmp.lt.s32.totalorder %v1398_v26, %v1393_v22  ;;  %vm401_vm2 = vcmp.lt.s32.totalorder %v382_v27, %v1393_v22  ;;  %vm402_vm3 = vcmp.lt.s32.totalorder %v383_v28, %v1393_v22  ;;  %v388_v42 = vadd.s32 64, %v1391_v21  ;;  %v432_v2 = vld [vmem:[#allocation2 + $0x8] sm:$0xff]  ;;  %v431_v3 = vld [vmem:[#allocation2] sm:$0xff] }
  0x71   : > { %vm779_vm4 = vmpackc.low %vm400_vm1, %vm399_vm0  ;;  %vm403_vm6 = vcmp.lt.s32.totalorder %v384_v29, %v1393_v22  ;;  %vm404_vm7 = vcmp.lt.s32.totalorder %v385_v30, %v1393_v22  ;;  %vm405_vm9 = vcmp.lt.s32.totalorder %v386_v35, %v1393_v22  ;;  %vm406_vm10 = vcmp.lt.s32.totalorder %v387_v36, %v1393_v22 }
  0x72   : > { %780 = vmatprep.subr.msk.bf16.mxu0 %vm779_vm4, %v778_v23  ;;  %vm1412_vm5 = vmpackc.low %vm402_vm3, %vm401_vm2  ;;  %v389_v43 = vadd.s32 72, %v1391_v21  ;;  %vm360_vm11 = vcmp.eq.s32.totalorder %v1391_v21, %v695_v37  ;;  %v796_v45 = vpack.c.bf16 %v373_v41, %v372_v40  ;;  %vm407_vm13 = vcmp.lt.s32.totalorder %v388_v42, %v1393_v22 }
  0x73   : > { %783 = vmatpush3.bf16.msk.msra.mxu0 %vm779_vm4, %v778_v23  ;;  %vm1427_vm8 = vmpackc.low %vm404_vm7, %vm403_vm6  ;;  %775 = vmatprep.mubr.msk.f32.mxu0 %vm360_vm11, %v1159_v44  ;;  %v390_v49 = vadd.s32 80, %v1391_v21  ;;  %v391_v50 = vadd.s32 88, %v1391_v21  ;;  %v802_v51 = vpack.c.bf16 %v375_v48, %v374_v47  ;;  %v392_v55 = vadd.s32 96, %v1391_v21 }
  0x74   : > { %786 = vmatprep.subr.msk.bf16.mxu0 %vm1412_vm5, %v784_v31  ;;  %vm1442_vm12 = vmpackc.low %vm406_vm10, %vm405_vm9  ;;  %vm408_vm14 = vcmp.lt.s32.totalorder %v389_v43, %v1393_v22  ;;  %v393_v56 = vadd.s32 104, %v1391_v21  ;;  %v808_v57 = vpack.c.bf16 %v377_v54, %v376_v53  ;;  %v394_v60 = vadd.s32 112, %v1391_v21 }
  0x75   : > { %vm1456_vm15 = vmpackc.low %vm408_vm14, %vm407_vm13  ;;  %vm409_vm0 = vcmp.lt.s32.totalorder %v390_v49, %v1393_v22  ;;  %vm410_vm1 = vcmp.lt.s32.totalorder %v391_v50, %v1393_v22  ;;  %vm411_vm3 = vcmp.lt.s32.totalorder %v392_v55, %v1393_v22  ;;  %v395_v61 = vadd.s32 120, %v1391_v21 }
  0x76   : > { %vm809_vm2 = vmpackc.low %vm410_vm1, %vm409_vm0  ;;  %vm412_vm4 = vcmp.lt.s32.totalorder %v393_v56, %v1393_v22  ;;  %v814_v62 = vpack.c.bf16 %v379_v59, %v378_v58  ;;  %vm413_vm6 = vcmp.lt.s32.totalorder %v394_v60, %v1393_v22  ;;  %v820_v1 = vpack.c.bf16 %v381_v0, %v380_v63 }
  0x77   : > { %789 = vmatpush3.bf16.msk.msra.mxu0 %vm1412_vm5, %v784_v31  ;;  %vm815_vm5 = vmpackc.low %vm412_vm4, %vm411_vm3  ;;  %vm414_vm7 = vcmp.lt.s32.totalorder %v395_v61, %v1393_v22  ;;  %vm361_vm9 = vcmp.eq.s32.totalorder %v1398_v26, %v695_v37 }
  0x78   : > { %792 = vmatprep.subr.msk.bf16.mxu0 %vm1427_vm8, %v790_v38 }
  0x7b   : > { %795 = vmatpush3.bf16.msk.msra.mxu0 %vm1427_vm8, %v790_v38  ;;  %vm821_vm8 = vmpackc.low %vm414_vm7, %vm413_vm6 }
  0x7c   : > { %798 = vmatprep.subr.msk.bf16.mxu0 %vm1442_vm12, %v796_v45 }
  0x7f   : > { %801 = vmatpush3.bf16.msk.msra.mxu0 %vm1442_vm12, %v796_v45 }
  0x80   : > { %804 = vmatprep.subr.msk.bf16.mxu0 %vm1456_vm15, %v802_v51 }
  0x83   : > { %807 = vmatpush3.bf16.msk.msra.mxu0 %vm1456_vm15, %v802_v51 }
  0x84   : > { %810 = vmatprep.subr.msk.bf16.mxu0 %vm809_vm2, %v808_v57 }
  0x87   : > { %813 = vmatpush3.bf16.msk.msra.mxu0 %vm809_vm2, %v808_v57 }
  0x88   : > { %816 = vmatprep.subr.msk.bf16.mxu0 %vm815_vm5, %v814_v62 }
  0x8b   : > { %819 = vmatpush3.bf16.msk.msra.mxu0 %vm815_vm5, %v814_v62 }
  0x8c   : > { %822 = vmatprep.subr.msk.bf16.mxu0 %vm821_vm8, %v820_v1 }
  0x8f   : > { %825 = vmatpush3.bf16.msk.msra.mxu0 %vm821_vm8, %v820_v1 }
  0x92   : > { %776 = vmatmul.mubr.msk.f32.vlgmr.msra.gmra.mrb[0].mxu0 %vm361_vm9, %v1159_v44 }
 0x163   : > { %515 = sbr.rel (%p717_p1) target bundleno = 370 (0x172), region = 88 }
 0x165   : > { %v777_v4 = vpop.f32.mrb[0].mxu0 }
 0x166   : > { %v509_v5 = vadd.f32 %v777_v4, %v432_v2  ;;  %v499_v6 = vpop.f32.mrb[1].mxu0 }
 0x167   : > { %v508_v7 = vadd.f32 %v499_v6, %v431_v3 }
 0x168   : > { %511 = vst [vmem:[#allocation2 + $0x8] sm:$0xff] %v509_v5 }
 0x169   : > { %510 = vst [vmem:[#allocation2] sm:$0xff] %v508_v7 }
 0x16f   : > { %v517_v9 = vld [vmem:[#allocation2 + $0x8] sm:$0xff] }
 0x170   : > { %v516_v8 = vld [vmem:[#allocation2] sm:$0xff]  ;;  %519 = vst [vmem:[%s1385_s7 + $0x8] sm:$0xff] %v517_v9 }
 0x171   : > { %518 = vst [vmem:[%s1385_s7] sm:$0xff] %v516_v8 }
 0x172 PF: > { %s719_s1 = sshll.u32 %s1112_s15, 7  ;;  %s533_s19 = sshll.u32 %s1385_s7, 4  ;;  %s1493_s19 = int_to_ptr.vmem [resolvable:$true] %s533_s19 }
 0x173   : > { %s1490_s5 = scalar_lea.hbm %s1557_s2, %s719_s1  ;;  %s1497_s14 = scalar_lea.sflag [#allocation5], %s335_s29 }
 0x174   : > { %s982_s22 = scalar_lea.vmem %s1493_s19, 256  ;;  %s1160_s15 = smov [#allocation4]  }
 0x175   : > { %p983_p2 = scmp.ne.s32.totalorder %s1493_s19, %s982_s22  ;;  %s986_s20 = sshll.u32 %s1160_s15, 4  ;;  %s987_s20 = int_to_ptr.vmem [resolvable:$false] %s986_s20 }
 0x176   : > { %s988_s28 = scalar_lea.vmem %s987_s20, 512  ;;  %p989_p5 = scmp.lt.s32.totalorder %s1493_s19, %s987_s20 }
 0x177   : > { %p984_p3 = pnand %p983_p2, %p1251_p7  ;;  %p990_p6 = scmp.lt.s32.totalorder %s988_s28, %s982_s22 }
 0x179   : > { %p985_p4 = pneg %p984_p3  ;;  %p991_p8 = por %p990_p6, %p989_p5 }
 0x17b   : > { %p992_p9 = pnand %p991_p8, %p985_p4 }
 0x17d   : > { %995 = shalt.err (!%p992_p9)
}
 0x17e   : > { %s996_s29 = scalar_lea.hbm %s1490_s5, 256  ;;  %s1000_s7 = scalar_lea.hbm %s1557_s2, 512 }
 0x17f   : > { %p997_p10 = scmp.ne.s32.totalorder %s1490_s5, %s996_s29  ;;  %p1001_p0 = scmp.lt.u32.totalorder %s1490_s5, %s1557_s2 }
 0x180   : > { %p1002_p1 = scmp.lt.u32.totalorder %s1000_s7, %s996_s29  ;;  %p1004_p3 = scmp.lt.u32.totalorder %s996_s29, %s1490_s5 }
 0x181   : > { %p998_p11 = pnand %p997_p10, %p1251_p7 }
 0x182   : > { %p1003_p2 = por %p1002_p1, %p1001_p0 }
 0x183   : > { %p999_p13 = pneg %p998_p11 }
 0x184   : > { %p1005_p4 = por %p1004_p3, %p1003_p2 }
 0x186   : > { %p1006_p5 = pnand %p1005_p4, %p999_p13 }
 0x188   : > { %1009 = shalt.err (!%p1006_p5)
}
 0x189   : > { %s1161_s6 = smov 128   ;;  %s1162_s8 = smov 256  }
 0x18a   : > { %s1163_s1 = smov 8  }
 0x18b   : > { %826 = dma.vmem_to_hbm [thread:$0]  (%p1251_p7), %s1493_s19, 256, %s1490_s5, %s1497_s14, %s1161_s6, %s1162_s8, %s1163_s1  }
 0x18c PF: > { %p832_p6 = scmp.ge.s32.totalorder %s1124_s18, 2  ;;  %s548_s25 = sand.u32 1, %s1088_s9  }
 0x18d   : > { %s549_s21 = scalar_lea.sflag [#allocation5], %s548_s25 }
 0x18e   : > { %p829_p8 = pnand %p832_p6, %p1259_p12 }
 0x190   : > { %1083 = dma.done.wait (!%p829_p8), %s549_s21, 256  }
 0x191   : > { %1085 = vsyncadd (!%p829_p8), %s549_s21, 4294967040  ;;  %s15_s18 = sadd.s32 1, %s1124_s18   ;;  %s1578_s27 = sld [smem:[#allocation7_spill]] }
 0x192   : > { %p12_p9 = scmp.ge.s32.totalorder %s15_s18, 8   ;;  %s1579_s5 = sld [smem:[#allocation8_spill]] }
 0x193   : > { %s1580_s9 = smov %s1092_s10  ;;  %s1581_s10 = smov %s1096_s11 }
 0x194   : > { %s1582_s11 = smov %s1264_s3  ;;  %s1583_s12 = smov %s1104_s13 }
 0x195   : > { %s1584_s13 = smov %s1267_s4  ;;  %s1585_s14 = smov %s1116_s16 }
 0x196   : > { %s1586_s15 = smov %s1120_s17  ;;  %14 = sbr.rel (!%p12_p9) target bundleno = 8 (0x8), region = 161 }
 0x197   : > { %s1587_s16 = smov %s1578_s27 }
 0x198   : > { %s1588_s17 = smov %s1579_s5 }
 0x19d   :  { %554 = vsyncpa [#allocation5], 1 }
 0x19e   :  { %556 = vsyncpa [#allocation5 + $0x1], 1 }

</bundles_post_ra>
